<compile_context>
chip_gen: v7x
topology: tpu7x:2x2x1
jax: 0.10.0
libtpu: 0.0.40
codegen_flags: <defaults>
</compile_context>

<pallas_src>
import jax
import jax.numpy as jnp
from jax import lax
from jax.experimental import pallas as pl
from jax.experimental.pallas import tpu as pltpu


def _round_up(n, m):
    return ((n + m - 1) // m) * m


def _classifier_kernel(x_ref, wh_ref, bh_ref, wo_ref, bo_ref, out_ref):
    # x:  [TB, D]   wh: [D, D] (PyTorch [out, in])   bh: [1, D]
    # wo: [C, D]    bo: [1, C]                        out: [TB, C]
    x = x_ref[...]

    # hidden = tanh(x @ Wh^T + bh)  -- contract dim 1 of x with dim 1 of Wh
    h = lax.dot_general(
        x, wh_ref[...],
        dimension_numbers=(((1,), (1,)), ((), ())),
        preferred_element_type=jnp.float32,
    )
    h = jnp.tanh(h + bh_ref[...])

    # logits = h @ Wo^T + bo  (cast back to MXU operand dtype, accumulate f32)
    logits = lax.dot_general(
        h.astype(wo_ref.dtype), wo_ref[...],
        dimension_numbers=(((1,), (1,)), ((), ())),
        preferred_element_type=jnp.float32,
    )
    logits = logits + bo_ref[...]

    num_classes = logits.shape[-1]
    if num_classes == 2:
        # Exact 2-class softmax without cross-lane reduce or divide:
        #   p1 = exp(l1) / (exp(l0) + exp(l1)) = sigmoid(l1 - l0),  p0 = 1 - p1
        p1 = jax.nn.sigmoid(logits[:, 1:2] - logits[:, 0:1])
        p0 = 1.0 - p1
        cls = lax.broadcasted_iota(jnp.int32, logits.shape, 1)
        probs = jnp.where(cls == 0, p0, p1)
    else:
        m = jnp.max(logits, axis=-1, keepdims=True)
        e = jnp.exp(logits - m)
        denom = jnp.sum(e, axis=-1, keepdims=True)
        probs = e * pl.reciprocal(denom, approx=False)

    out_ref[...] = probs.astype(out_ref.dtype)


def transformer_classifier_forward(x, w_hidden, b_hidden, w_output, b_output,
                                   *, tile_b=512, use_bf16=False):
    """Forward pass of TransformerClassifier.

    x:        [B, D] float32
    w_hidden: [D, D] (PyTorch layout: out x in), b_hidden: [D]
    w_output: [C, D] (C = 2),                    b_output: [C]
    Returns softmax probabilities [B, C] in float32.
    """
    B, D = x.shape
    C = w_output.shape[0]

    # Batch tile: multiple of 8 sublanes, no bigger than the (padded) batch.
    tb = max(8, min(_round_up(tile_b, 8), _round_up(B, 8)))
    B_pad = _round_up(B, tb)
    if B_pad != B:
        x = jnp.pad(x, ((0, B_pad - B), (0, 0)))

    compute_dtype = jnp.bfloat16 if use_bf16 else jnp.float32
    x_in = x.astype(compute_dtype)
    wh = w_hidden.astype(compute_dtype)
    wo = w_output.astype(compute_dtype)
    bh = b_hidden.reshape(1, D).astype(jnp.float32)
    bo = b_output.reshape(1, C).astype(jnp.float32)

    grid = (B_pad // tb,)

    # Rough VMEM budget: double-buffered x/out tiles + resident weights/biases.
    itemsize = 2 if use_bf16 else 4
    io_bytes = 2 * tb * (D * itemsize + C * 4)
    w_bytes = 2 * ((D * D + C * D) * itemsize + (D + C) * 4)
    vmem_limit = int(min(64 << 20, max(16 << 20, 4 * (io_bytes + w_bytes))))

    out = pl.pallas_call(
        _classifier_kernel,
        out_shape=jax.ShapeDtypeStruct((B_pad, C), jnp.float32),
        grid=grid,
        in_specs=[
            pl.BlockSpec((tb, D), lambda i: (i, 0)),   # x tile (pipelined)
            pl.BlockSpec((D, D), lambda i: (0, 0)),    # hidden weight (resident)
            pl.BlockSpec((1, D), lambda i: (0, 0)),    # hidden bias   (resident)
            pl.BlockSpec((C, D), lambda i: (0, 0)),    # output weight (resident)
            pl.BlockSpec((1, C), lambda i: (0, 0)),    # output bias   (resident)
        ],
        out_specs=pl.BlockSpec((tb, C), lambda i: (i, 0)),
        compiler_params=pltpu.CompilerParams(
            dimension_semantics=("parallel",),
            vmem_limit_bytes=vmem_limit,
        ),
    )(x_in, wh, bh, wo, bo)

    return out[:B]


def _reference_forward(x, w_hidden, b_hidden, w_output, b_output):
    h = jnp.tanh(x @ w_hidden.T + b_hidden)
    logits = h @ w_output.T + b_output
    return jax.nn.softmax(logits, axis=1)


if __name__ == "__main__":
    d_model = 32
    n_classes = 2

    key = jax.random.PRNGKey(0)
    kx, k1, k2, k3, k4, kx2 = jax.random.split(key, 6)

    # "PyTorch-like" init: uniform(-1/sqrt(fan_in), 1/sqrt(fan_in))
    bound_h = 1.0 / (d_model ** 0.5)
    w_hidden = jax.random.uniform(k1, (d_model, d_model), jnp.float32,
                                  -bound_h, bound_h)
    b_hidden = jax.random.uniform(k2, (d_model,), jnp.float32, -bound_h, bound_h)
    w_output = jax.random.uniform(k3, (n_classes, d_model), jnp.float32,
                                  -bound_h, bound_h)
    b_output = jax.random.uniform(k4, (n_classes,), jnp.float32,
                                  -bound_h, bound_h)

    # --- Test 1: f32 path, multi-step grid (batch tiled over 2 grid steps) ---
    batch = 256
    x = jax.random.normal(kx, (batch, d_model), dtype=jnp.float32)
    out = transformer_classifier_forward(x, w_hidden, b_hidden,
                                         w_output, b_output,
                                         tile_b=128, use_bf16=False)
    out = jax.block_until_ready(out)
    ref = _reference_forward(x, w_hidden, b_hidden, w_output, b_output)
    assert out.shape == (batch, n_classes)
    assert jnp.allclose(out, ref, atol=1e-5, rtol=1e-5), "f32 mismatch vs reference"
    assert jnp.allclose(jnp.sum(out, axis=1), 1.0, atol=1e-5), "softmax not normalized"

    # --- Test 2: bf16 MXU operands + non-divisible batch (padding path) ---
    batch2 = 50
    x2 = jax.random.normal(kx2, (batch2, d_model), dtype=jnp.float32)
    out2 = transformer_classifier_forward(x2, w_hidden, b_hidden,
                                          w_output, b_output,
                                          tile_b=32, use_bf16=True)
    out2 = jax.block_until_ready(out2)
    ref2 = _reference_forward(x2, w_hidden, b_hidden, w_output, b_output)
    assert out2.shape == (batch2, n_classes)
    assert jnp.allclose(out2, ref2, atol=2e-2), "bf16 mismatch vs reference"
    assert jnp.allclose(jnp.sum(out2, axis=1), 1.0, atol=1e-3), "softmax not normalized"

    print("KERNEL_OK")
</pallas_src>

<mosaic_0001>
module attributes {stable_mosaic.version = 11 : i64} {
  func.func @_classifier_kernel(%arg0: i32, %arg1: memref<128x32xf32, #tpu.memory_space<vmem>>, %arg2: memref<32x32xf32, #tpu.memory_space<vmem>>, %arg3: memref<1x32xf32, #tpu.memory_space<vmem>>, %arg4: memref<2x32xf32, #tpu.memory_space<vmem>>, %arg5: memref<1x2xf32, #tpu.memory_space<vmem>>, %arg6: memref<128x2xf32, #tpu.memory_space<vmem>>) attributes {dimension_semantics = [#tpu.dimension_semantics<parallel>], iteration_bounds = array<i64: 2>, scalar_prefetch = 0 : i64, scratch_operands = 0 : i64, tpu.core_type = #tpu.core_type<tc>, window_params = [{transform_indices = @transform_0, window_bounds = array<i64: 128, 32>}, {pipeline_mode = #tpu.pipeline_mode<synchronous>, transform_indices = @transform_1, window_bounds = array<i64: 32, 32>}, {pipeline_mode = #tpu.pipeline_mode<synchronous>, transform_indices = @transform_2, window_bounds = array<i64: 1, 32>}, {pipeline_mode = #tpu.pipeline_mode<synchronous>, transform_indices = @transform_3, window_bounds = array<i64: 2, 32>}, {pipeline_mode = #tpu.pipeline_mode<synchronous>, transform_indices = @transform_4, window_bounds = array<i64: 1, 2>}, {transform_indices = @transform_5, window_bounds = array<i64: 128, 2>}]} {
    %c0 = arith.constant 0 : index
    %c0_0 = arith.constant 0 : index
    %0 = vector.load %arg1[%c0, %c0_0] : memref<128x32xf32, #tpu.memory_space<vmem>>, vector<128x32xf32>
    %c0_1 = arith.constant 0 : index
    %c0_2 = arith.constant 0 : index
    %1 = vector.load %arg2[%c0_1, %c0_2] : memref<32x32xf32, #tpu.memory_space<vmem>>, vector<32x32xf32>
    %cst = arith.constant dense<0.000000e+00> : vector<128x32xf32>
    %2 = tpu.matmul %0, %1, %cst {dimension_numbers = #tpu.dot_dimension_numbers<[1], [1], [0], [0], [0, 0, 1, 0], [], []>} : vector<128x32xf32>, vector<32x32xf32>, vector<128x32xf32> -> vector<128x32xf32>
    %c0_3 = arith.constant 0 : index
    %c0_4 = arith.constant 0 : index
    %3 = vector.load %arg3[%c0_3, %c0_4] : memref<1x32xf32, #tpu.memory_space<vmem>>, vector<1x32xf32>
    %4 = vector.broadcast %3 : vector<1x32xf32> to vector<128x32xf32>
    %5 = arith.addf %2, %4 : vector<128x32xf32>
    %6 = math.tanh %5 : vector<128x32xf32>
    %c0_5 = arith.constant 0 : index
    %c0_6 = arith.constant 0 : index
    %7 = vector.load %arg4[%c0_5, %c0_6] : memref<2x32xf32, #tpu.memory_space<vmem>>, vector<2x32xf32>
    %cst_7 = arith.constant dense<0.000000e+00> : vector<128x2xf32>
    %8 = tpu.matmul %6, %7, %cst_7 {dimension_numbers = #tpu.dot_dimension_numbers<[1], [1], [0], [0], [0, 0, 1, 0], [], []>} : vector<128x32xf32>, vector<2x32xf32>, vector<128x2xf32> -> vector<128x2xf32>
    %c0_8 = arith.constant 0 : index
    %c0_9 = arith.constant 0 : index
    %9 = vector.load %arg5[%c0_8, %c0_9] : memref<1x2xf32, #tpu.memory_space<vmem>>, vector<1x2xf32>
    %10 = vector.broadcast %9 : vector<1x2xf32> to vector<128x2xf32>
    %11 = arith.addf %8, %10 : vector<128x2xf32>
    %12 = vector.extract_strided_slice %11 {offsets = [0, 1], sizes = [128, 1], strides = [1, 1]} : vector<128x2xf32> to vector<128x1xf32>
    %13 = vector.extract_strided_slice %11 {offsets = [0, 0], sizes = [128, 1], strides = [1, 1]} : vector<128x2xf32> to vector<128x1xf32>
    %14 = arith.subf %12, %13 : vector<128x1xf32>
    %15 = arith.negf %14 : vector<128x1xf32>
    %16 = math.exp %15 : vector<128x1xf32>
    %cst_10 = arith.constant 1.000000e+00 : f32
    %17 = vector.broadcast %cst_10 : f32 to vector<128x1xf32>
    %18 = arith.addf %17, %16 : vector<128x1xf32>
    %19 = arith.divf %17, %18 : vector<128x1xf32>
    %cst_11 = arith.constant 1.000000e+00 : f32
    %20 = vector.broadcast %cst_11 : f32 to vector<128x1xf32>
    %21 = arith.subf %20, %19 : vector<128x1xf32>
    %22 = tpu.iota {dimensions = array<i32: 1>} : vector<128x2xi32>
    %c0_i32 = arith.constant 0 : i32
    %23 = vector.broadcast %c0_i32 : i32 to vector<128x2xi32>
    %24 = arith.cmpi eq, %22, %23 : vector<128x2xi32>
    %25 = vector.shape_cast %21 : vector<128x1xf32> to vector<128x1xf32>
    %26 = vector.broadcast %25 : vector<128x1xf32> to vector<128x2xf32>
    %27 = vector.shape_cast %19 : vector<128x1xf32> to vector<128x1xf32>
    %28 = vector.broadcast %27 : vector<128x1xf32> to vector<128x2xf32>
    %29 = arith.select %24, %26, %28 : vector<128x2xi1>, vector<128x2xf32>
    %c0_12 = arith.constant 0 : index
    %c0_13 = arith.constant 0 : index
    %30 = vector.load %arg6[%c0_12, %c0_13] : memref<128x2xf32, #tpu.memory_space<vmem>>, vector<128x2xf32>
    tpu.vector_store %arg6[%c0_12, %c0_13], %29 {strides = array<i32>} : memref<128x2xf32, #tpu.memory_space<vmem>>, vector<128x2xf32>,
    return
  }
  func.func @transform_0(%arg0: i32) -> (i32, i32) {
    %c0_i32 = arith.constant 0 : i32
    %c0_i32_0 = arith.constant 0 : i32
    return %arg0, %c0_i32 : i32, i32
  }
  func.func @transform_1(%arg0: i32) -> (i32, i32) {
    %c0_i32 = arith.constant 0 : i32
    %c0_i32_0 = arith.constant 0 : i32
    %c0_i32_1 = arith.constant 0 : i32
    return %c0_i32, %c0_i32_0 : i32, i32
  }
  func.func @transform_2(%arg0: i32) -> (i32, i32) {
    %c0_i32 = arith.constant 0 : i32
    %c0_i32_0 = arith.constant 0 : i32
    %c0_i32_1 = arith.constant 0 : i32
    return %c0_i32, %c0_i32_0 : i32, i32
  }
  func.func @transform_3(%arg0: i32) -> (i32, i32) {
    %c0_i32 = arith.constant 0 : i32
    %c0_i32_0 = arith.constant 0 : i32
    %c0_i32_1 = arith.constant 0 : i32
    return %c0_i32, %c0_i32_0 : i32, i32
  }
  func.func @transform_4(%arg0: i32) -> (i32, i32) {
    %c0_i32 = arith.constant 0 : i32
    %c0_i32_0 = arith.constant 0 : i32
    %c0_i32_1 = arith.constant 0 : i32
    return %c0_i32, %c0_i32_0 : i32, i32
  }
  func.func @transform_5(%arg0: i32) -> (i32, i32) {
    %c0_i32 = arith.constant 0 : i32
    %c0_i32_0 = arith.constant 0 : i32
    return %arg0, %c0_i32 : i32, i32
  }
}

</mosaic_0001>

<bundles_post_ra>
// kernel: tpu_custom_call.1
= control target key start
LH: loop header
LB: loop body
LE: loop exit
PB: predicated region body
PF: predicated region fallthrough
CT: control target
= control target key end

     0   :  { %s1446_s18 = smov 0   ;;  %s1692_s0 = inlined_call_operand.vmem [shape: f32[256,32], index: 0, kind: input, shape index: {}]   ;;  %s1693_s1 = inlined_call_operand.vmem [shape: f32[32,32], index: 1, kind: input, shape index: {}]   ;;  %s1694_s2 = inlined_call_operand.vmem [shape: f32[1,32], index: 2, kind: input, shape index: {}]   ;;  %s1695_s3 = inlined_call_operand.vmem [shape: f32[2,32], index: 3, kind: input, shape index: {}]   ;;  %s1696_s4 = inlined_call_operand.vmem [shape: f32[1,2], index: 4, kind: input, shape index: {}]   ;;  %s1697_s5 = inlined_call_operand.vmem [shape: f32[256,2], index: 5, kind: output, shape index: {}]  }
   0x1 LB: > { %s1125_s19 = sadd.s32 4294967295, %s1412_s18   ;;  %p1129_p0 = scmp.ge.s32.totalorder %s1412_s18, 1  ;;  %s1412_s18 = sphi %s1446_s18, %s15_s18  }
   0x2   : > { %p188_p1 = scmp.lt.s32.totalorder %s1412_s18, 3 }
   0x4   : > { %p189_p2 = pnand %p1129_p0, %p188_p1 }
   0x5   : > { %v244_v0 = vld [vmem:[%s1693_s1] sm:$0xff] (!%p189_p2)  ;;  %v245_v1 = vld [vmem:[%s1693_s1 + $0x8] sm:$0xff] (!%p189_p2)  ;;  %vm255_vm0 = vcmask (!%p189_p2), 261120   ;;  %v246_v2 = vld [vmem:[%s1693_s1 + $0x10] sm:$0xff] (!%p189_p2)  ;;  %s1130_s26 = sshll.u32 (!%p189_p2), %s1125_s19, 4  ;;  %s1414_s14 = smov (!%p189_p2), 1  }
   0x6   : > { %192 = sbr.rel (%p189_p2) target bundleno = 802 (0x322), region = 40  ;;  %v1286_v3 = vpack.c.bf16 (!%p189_p2), %v245_v1, %v244_v0  ;;  %vm1287_vm1 = vmpackc.low (!%p189_p2), %vm255_vm0, %vm255_vm0  ;;  %v247_v4 = vld [vmem:[%s1693_s1 + $0x18] sm:$0xff] (!%p189_p2)  ;;  %p217_p3 = scmp.lt.s32.totalorder (!%p189_p2), %s1130_s26, 31  ;;  %v477_v22 = vld [vmem:[%s1695_s3] sm:$0x3] (!%p189_p2)  ;;  %vm1052_vm3 = vcmask (!%p189_p2), 15360  }
   0x7   : > { %v1292_v5 = vpack.c.bf16 (!%p189_p2), %v247_v4, %v246_v2  ;;  %1260 = vmatprep.subr.msk.mxu1 (!%p189_p2), %vm255_vm0, %v477_v22  ;;  %v1518_v23 = vld [vmem:[%s1694_s2] ss:$0 sm:$0xff] (!%p189_p2) }
   0x8   : > { %1288 = vmatprep.subr.msk.bf16.mxu0 (!%p189_p2), %vm1287_vm1, %v1286_v3  ;;  %1261 = vmatpush3.xpose.msk.msra.mxu1 (!%p189_p2), %vm255_vm0, %v477_v22 }
   0x9   : > { %1291 = vmatpush3.bf16.xpose.msk.msra.mxu0 (!%p189_p2), %vm1287_vm1, %v1286_v3 }
   0xa   : > { %1294 = vmatprep.subr.msk.bf16.mxu0 (!%p189_p2), %vm1287_vm1, %v1292_v5 }
   0xd   : > { %s1699_s26 = smov (!%p217_p3, %s1130_s26), 31 }
   0xe   : > { %s1131_s29 = sshll.u32 %s1699_s26, 3 }
   0xf   : > { %s1476_s7 = scalar_lea.vmem %s1692_s0, %s1131_s29  ;;  %s1623_s17 = scalar_lea.vmem %s1697_s5, %s1131_s29 }
  0x10   : > { %v228_v6 = vld [vmem:[%s1476_s7] sm:$0xff]  ;;  %v229_v7 = vld [vmem:[%s1476_s7 + $0x8] sm:$0xff]  ;;  %v230_v8 = vld [vmem:[%s1476_s7 + $0x10] sm:$0xff] }
  0x11   : > { %1236 = vmatprep.mubr.msk.f32.mxu0 %vm255_vm0, %v228_v6  ;;  %1297 = vmatpush3.bf16.xpose.msk.msra.mxu0 %vm1287_vm1, %v1292_v5  ;;  %v231_v9 = vld [vmem:[%s1476_s7 + $0x18] sm:$0xff]  ;;  %v232_v10 = vld [vmem:[%s1476_s7 + $0x20] sm:$0xff]  ;;  %v233_v11 = vld [vmem:[%s1476_s7 + $0x28] sm:$0xff] }
  0x12   : > { %v234_v12 = vld [vmem:[%s1476_s7 + $0x30] sm:$0xff]  ;;  %v235_v13 = vld [vmem:[%s1476_s7 + $0x38] sm:$0xff]  ;;  %v236_v14 = vld [vmem:[%s1476_s7 + $0x40] sm:$0xff] }
  0x13   : > { %v237_v15 = vld [vmem:[%s1476_s7 + $0x48] sm:$0xff]  ;;  %v238_v16 = vld [vmem:[%s1476_s7 + $0x50] sm:$0xff]  ;;  %v239_v17 = vld [vmem:[%s1476_s7 + $0x58] sm:$0xff] }
  0x14   : > { %v240_v18 = vld [vmem:[%s1476_s7 + $0x60] sm:$0xff]  ;;  %v241_v19 = vld [vmem:[%s1476_s7 + $0x68] sm:$0xff]  ;;  %v242_v20 = vld [vmem:[%s1476_s7 + $0x70] sm:$0xff] }
  0x15   : > { %v243_v21 = vld [vmem:[%s1476_s7 + $0x78] sm:$0xff] }
  0x18   : > { %1237 = vmatmul.mubr.msk.f32.vlgmr.msra.gmra.mrb[0].mxu0 %vm255_vm0, %v229_v7 }
  0x19   : > { %1239 = vmatprep.mubr.msk.f32.mxu0 %vm255_vm0, %v230_v8  ;;  %v1155_v8 = vld [vmem:[%s1696_s4] ss:$0 sm:$0xff] }
  0x1c   : > { %1240 = vmatmul.mubr.msk.f32.gmra.mrb[2].mxu0 %vm255_vm0, %v231_v9 }
  0x1d   : > { %1242 = vmatprep.mubr.msk.f32.mxu0 %vm255_vm0, %v232_v10 }
  0x20   : > { %1243 = vmatmul.mubr.msk.f32.gmra.mrb[4].mxu0 %vm255_vm0, %v233_v11 }
  0x21   : > { %1245 = vmatprep.mubr.msk.f32.mxu0 %vm255_vm0, %v234_v12 }
  0x24   : > { %1246 = vmatmul.mubr.msk.f32.gmra.mrb[6].mxu0 %vm255_vm0, %v235_v13 }
  0x25   : > { %1248 = vmatprep.mubr.msk.f32.mxu0 %vm255_vm0, %v236_v14 }
  0x28   : > { %1249 = vmatmul.mubr.msk.f32.gmra.mrb[8].mxu0 %vm255_vm0, %v237_v15 }
  0x29   : > { %1251 = vmatprep.mubr.msk.f32.mxu0 %vm255_vm0, %v238_v16 }
  0x2c   : > { %1252 = vmatmul.mubr.msk.f32.gmra.mrb[10].mxu0 %vm255_vm0, %v239_v17 }
  0x2d   : > { %1254 = vmatprep.mubr.msk.f32.mxu0 %vm255_vm0, %v240_v18 }
  0x30   : > { %1255 = vmatmul.mubr.msk.f32.gmra.mrb[12].mxu0 %vm255_vm0, %v241_v19 }
  0x31   : > { %1257 = vmatprep.mubr.msk.f32.mxu0 %vm255_vm0, %v242_v20 }
  0x34   : > { %1258 = vmatmul.mubr.msk.f32.gmra.mrb[14].mxu0 %vm255_vm0, %v243_v21 }
  0xeb   : > { %v1238_v24 = vpop.f32.mrb[0].mxu0 }
  0xec   : > { %v388_v25 = vadd.f32 %v1238_v24, %v1518_v23  ;;  %v382_v26 = vpop.f32.mrb[1].mxu0 }
  0xed   : > { %v383_v27 = vadd.f32 %v1518_v23, %v382_v26 }
  0xef   : > { %1310 = vtanh.f32 %v383_v27  ;;  %v1241_v28 = vpop.f32.mrb[2].mxu0 }
  0xf0   : > { %1312 = vtanh.f32 %v388_v25  ;;  %v398_v29 = vadd.f32 %v1241_v28, %v1518_v23  ;;  %v392_v30 = vpop.f32.mrb[3].mxu0 }
  0xf1   : > { %v393_v31 = vadd.f32 %v1518_v23, %v392_v30 }
  0xf2   : > { %1314 = vtanh.f32 %v398_v29  ;;  %v1415_v29 = vmov 1  }
  0xf3   : > { %1316 = vtanh.f32 %v393_v31  ;;  %v1244_v32 = vpop.f32.mrb[4].mxu0  ;;  %1308 = vset.pattern.permute.xlu0 %v1415_v29  ;;  %1309 = vset.pattern.permute.xlu1 %v1415_v29 }
  0xf4   : > { %v408_v33 = vadd.f32 %v1244_v32, %v1518_v23  ;;  %v402_v34 = vpop.f32.mrb[5].mxu0 }
  0xf5   : > { %v403_v35 = vadd.f32 %v1518_v23, %v402_v34 }
  0xf6   : > { %1318 = vtanh.f32 %v408_v33 }
  0xf7   : > { %1320 = vtanh.f32 %v403_v35  ;;  %v1247_v36 = vpop.f32.mrb[6].mxu0 }
  0xf8   : > { %v418_v37 = vadd.f32 %v1247_v36, %v1518_v23  ;;  %v412_v38 = vpop.f32.mrb[7].mxu0 }
  0xf9   : > { %v1311_v39 = vpop.eup %1310  ;;  %v413_v40 = vadd.f32 %v1518_v23, %v412_v38 }
  0xfa   : > { %v1313_v41 = vpop.eup %1312  ;;  %1322 = vtanh.f32 %v418_v37  ;;  %1262 = vmatprep.mubr.msk.f32.mxu1 %vm255_vm0, %v1311_v39 }
  0xfb   : > { %1324 = vtanh.f32 %v413_v40  ;;  %v1250_v42 = vpop.f32.mrb[8].mxu0  ;;  %1263 = vmatmul.mubr.msk.f32.vlgmr.msra.gmra.mrb[0].mxu1 %vm255_vm0, %v1313_v41 }
  0xfc   : > { %v1315_v43 = vpop.eup %1314  ;;  %v428_v44 = vadd.f32 %v1250_v42, %v1518_v23  ;;  %v422_v45 = vpop.f32.mrb[9].mxu0 }
  0xfd   : > { %v1317_v46 = vpop.eup %1316  ;;  %v423_v47 = vadd.f32 %v1518_v23, %v422_v45 }
  0xfe   : > { %1326 = vtanh.f32 %v428_v44  ;;  %1265 = vmatprep.mubr.msk.f32.mxu1 %vm255_vm0, %v1317_v46 }
  0xff   : > { %1328 = vtanh.f32 %v423_v47  ;;  %v1253_v48 = vpop.f32.mrb[10].mxu0  ;;  %1266 = vmatmul.mubr.msk.f32.gmra.mrb[2].mxu1 %vm255_vm0, %v1315_v43 }
 0x100   : > { %v1319_v49 = vpop.eup %1318  ;;  %v438_v50 = vadd.f32 %v1253_v48, %v1518_v23  ;;  %v432_v51 = vpop.f32.mrb[11].mxu0 }
 0x101   : > { %v1321_v52 = vpop.eup %1320  ;;  %v433_v53 = vadd.f32 %v1518_v23, %v432_v51 }
 0x102   : > { %1330 = vtanh.f32 %v438_v50  ;;  %1268 = vmatprep.mubr.msk.f32.mxu1 %vm255_vm0, %v1321_v52 }
 0x103   : > { %1332 = vtanh.f32 %v433_v53  ;;  %v1256_v54 = vpop.f32.mrb[12].mxu0  ;;  %1269 = vmatmul.mubr.msk.f32.gmra.mrb[4].mxu1 %vm255_vm0, %v1319_v49 }
 0x104   : > { %v1323_v55 = vpop.eup %1322  ;;  %v448_v56 = vadd.f32 %v1256_v54, %v1518_v23  ;;  %v442_v57 = vpop.f32.mrb[13].mxu0 }
 0x105   : > { %v1325_v58 = vpop.eup %1324  ;;  %v443_v59 = vadd.f32 %v1518_v23, %v442_v57 }
 0x106   : > { %1334 = vtanh.f32 %v448_v56  ;;  %1271 = vmatprep.mubr.msk.f32.mxu1 %vm255_vm0, %v1325_v58 }
 0x107   : > { %1336 = vtanh.f32 %v443_v59  ;;  %v1259_v60 = vpop.f32.mrb[14].mxu0  ;;  %1272 = vmatmul.mubr.msk.f32.gmra.mrb[6].mxu1 %vm255_vm0, %v1323_v55 }
 0x108   : > { %v1327_v61 = vpop.eup %1326  ;;  %v458_v62 = vadd.f32 %v1259_v60, %v1518_v23  ;;  %v452_v63 = vpop.f32.mrb[15].mxu0 }
 0x109   : > { %v1329_v0 = vpop.eup %1328  ;;  %v453_v1 = vadd.f32 %v1518_v23, %v452_v63 }
 0x10a   : > { %1338 = vtanh.f32 %v458_v62  ;;  %1274 = vmatprep.mubr.msk.f32.mxu1 %vm255_vm0, %v1329_v0 }
 0x10b   : > { %1340 = vtanh.f32 %v453_v1  ;;  %1275 = vmatmul.mubr.msk.f32.gmra.mrb[8].mxu1 %vm255_vm0, %v1327_v61 }
 0x10c   : > { %v1331_v2 = vpop.eup %1330 }
 0x10d   : > { %v1333_v3 = vpop.eup %1332 }
 0x10e   : > { %1277 = vmatprep.mubr.msk.f32.mxu1 %vm255_vm0, %v1333_v3 }
 0x10f   : > { %1278 = vmatmul.mubr.msk.f32.gmra.mrb[10].mxu1 %vm255_vm0, %v1331_v2 }
 0x110   : > { %v1335_v4 = vpop.eup %1334 }
 0x111   : > { %v1337_v5 = vpop.eup %1336 }
 0x112   : > { %1280 = vmatprep.mubr.msk.f32.mxu1 %vm255_vm0, %v1337_v5 }
 0x113   : > { %1281 = vmatmul.mubr.msk.f32.gmra.mrb[12].mxu1 %vm255_vm0, %v1335_v4 }
 0x114   : > { %v1339_v6 = vpop.eup %1338 }
 0x115   : > { %v1341_v7 = vpop.eup %1340 }
 0x116   : > { %1283 = vmatprep.mubr.msk.f32.mxu1 %vm255_vm0, %v1341_v7 }
 0x117   : > { %1284 = vmatmul.mubr.msk.f32.gmra.mrb[14].mxu1 %vm255_vm0, %v1339_v6 }
 0x1ce   : > { %v1264_v9 = vpop.f32.mrb[0].mxu1 }
 0x1cf   : > { %v608_v10 = vadd.f32 %v1264_v9, %v1155_v8  ;;  %v602_v11 = vpop.f32.mrb[1].mxu1 }
 0x1d0   : > { %v603_v13 = vadd.f32 %v1155_v8, %v602_v11 }
 0x1d1   : > { %699 = vrot.lane.b32.xlu0 %v608_v10, %s1414_s14 }
 0x1d2   : > { %v1267_v12 = vpop.f32.mrb[2].mxu1 }
 0x1d3   : > { %v618_v14 = vadd.f32 %v1267_v12, %v1155_v8  ;;  %v612_v15 = vpop.f32.mrb[3].mxu1 }
 0x1d4   : > { %v613_v17 = vadd.f32 %v1155_v8, %v612_v15 }
 0x1d5   : > { %703 = vrot.lane.b32.xlu1 %v618_v14, %s1414_s14  ;;  %697 = vrot.lane.b32.xlu0 %v603_v13, %s1414_s14 }
 0x1d6   : > { %v1270_v16 = vpop.f32.mrb[4].mxu1 }
 0x1d7   : > { %v622_v18 = vpop.f32.mrb[5].mxu1  ;;  %v628_v20 = vadd.f32 %v1270_v16, %v1155_v8 }
 0x1d8   : > { %v1558_v19 = vadd.f32 %v1155_v8, %v622_v18 }
 0x1d9   : > { %701 = vrot.lane.b32.xlu1 %v613_v17, %s1414_s14 }
 0x1da   : > { %v1273_v21 = vpop.f32.mrb[6].mxu1  ;;  %705 = vrot.lane.b32.xlu0 %v1558_v19, %s1414_s14 }
 0x1db   : > { %v632_v22 = vpop.f32.mrb[7].mxu1  ;;  %v1565_v24 = vadd.f32 %v1273_v21, %v1155_v8 }
 0x1dc   : > { %v1563_v23 = vadd.f32 %v1155_v8, %v632_v22 }
 0x1dd   : > { %707 = vrot.lane.b32.xlu1 %v628_v20, %s1414_s14 }
 0x1de   : > { %v1276_v25 = vpop.f32.mrb[8].mxu1  ;;  %709 = vrot.lane.b32.xlu0 %v1563_v23, %s1414_s14 }
 0x1df   : > { %v642_v26 = vpop.f32.mrb[9].mxu1  ;;  %v1572_v28 = vadd.f32 %v1276_v25, %v1155_v8 }
 0x1e0   : > { %v1570_v27 = vadd.f32 %v1155_v8, %v642_v26 }
 0x1e1   : > { %711 = vrot.lane.b32.xlu1 %v1565_v24, %s1414_s14 }
 0x1e2   : > { %v1279_v30 = vpop.f32.mrb[10].mxu1  ;;  %713 = vrot.lane.b32.xlu0 %v1570_v27, %s1414_s14 }
 0x1e3   : > { %v652_v31 = vpop.f32.mrb[11].mxu1  ;;  %v1580_v33 = vadd.f32 %v1279_v30, %v1155_v8 }
 0x1e4   : > { %v1578_v32 = vadd.f32 %v1155_v8, %v652_v31 }
 0x1e5   : > { %715 = vrot.lane.b32.xlu1 %v1572_v28, %s1414_s14 }
 0x1e6   : > { %v1282_v34 = vpop.f32.mrb[12].mxu1  ;;  %717 = vrot.lane.b32.xlu0 %v1578_v32, %s1414_s14 }
 0x1e7   : > { %v662_v35 = vpop.f32.mrb[13].mxu1  ;;  %v1588_v37 = vadd.f32 %v1282_v34, %v1155_v8 }
 0x1e8   : > { %v1586_v36 = vadd.f32 %v1155_v8, %v662_v35 }
 0x1e9   : > { %719 = vrot.lane.b32.xlu1 %v1580_v33, %s1414_s14 }
 0x1ea   : > { %v1285_v38 = vpop.f32.mrb[14].mxu1  ;;  %721 = vrot.lane.b32.xlu0 %v1586_v36, %s1414_s14 }
 0x1eb   : > { %v672_v39 = vpop.f32.mrb[15].mxu1  ;;  %v1596_v41 = vadd.f32 %v1285_v38, %v1155_v8 }
 0x1ec   : > { %v1594_v40 = vadd.f32 %v1155_v8, %v672_v39 }
 0x1ed   : > { %723 = vrot.lane.b32.xlu1 %v1588_v37, %s1414_s14 }
 0x1ee   : > { %725 = vrot.lane.b32.xlu0 %v1594_v40, %s1414_s14 }
 0x1f1   : > { %727 = vrot.lane.b32.xlu1 %v1596_v41, %s1414_s14 }
 0x243   : > { %v700_v42 = vpop.permute.xlu0 %699 }
 0x244   : > { %v746_v43 = vsub.f32 %v608_v10, %v700_v42 }
 0x246   : > { %v1174_v44 = vmul.f32 -1.442695, %v746_v43 }
 0x247   : > { %v704_v45 = vpop.permute.xlu1 %703  ;;  %v698_v46 = vpop.permute.xlu0 %697 }
 0x248   : > { %1342 = vpow2.f32 %v1174_v44  ;;  %v748_v47 = vsub.f32 %v618_v14, %v704_v45  ;;  %v745_v48 = vsub.f32 %v603_v13, %v698_v46 }
 0x24a   : > { %v1173_v49 = vmul.f32 -1.442695, %v745_v48  ;;  %v1176_v50 = vmul.f32 -1.442695, %v748_v47 }
 0x24b   : > { %v702_v51 = vpop.permute.xlu1 %701 }
 0x24c   : > { %v747_v52 = vsub.f32 %v613_v17, %v702_v51  ;;  %1344 = vpow2.f32 %v1173_v49  ;;  %v706_v54 = vpop.permute.xlu0 %705 }
 0x24d   : > { %1346 = vpow2.f32 %v1176_v50  ;;  %v749_v57 = vsub.f32 %v1558_v19, %v706_v54 }
 0x24e   : > { %v1175_v53 = vmul.f32 -1.442695, %v747_v52 }
 0x24f   : > { %v708_v55 = vpop.permute.xlu1 %707  ;;  %v1177_v62 = vmul.f32 -1.442695, %v749_v57 }
 0x250   : > { %v750_v56 = vsub.f32 %v628_v20, %v708_v55  ;;  %1348 = vpow2.f32 %v1175_v53  ;;  %v710_v63 = vpop.permute.xlu0 %709 }
 0x251   : > { %v751_v4 = vsub.f32 %v1563_v23, %v710_v63 }
 0x252   : > { %v1343_v58 = vpop.eup %1342  ;;  %v1178_v60 = vmul.f32 -1.442695, %v750_v56 }
 0x253   : > { %v810_v59 = vadd.f32 1.0, %v1343_v58  ;;  %v712_v61 = vpop.permute.xlu1 %711  ;;  %v1179_v9 = vmul.f32 -1.442695, %v751_v4 }
 0x254   : > { %v752_v1 = vsub.f32 %v1565_v24, %v712_v61  ;;  %v714_v11 = vpop.permute.xlu0 %713 }
 0x255   : > { %1350 = vrcp.f32 %v810_v59  ;;  %v753_v15 = vsub.f32 %v1570_v27, %v714_v11 }
 0x256   : > { %v1345_v0 = vpop.eup %1344  ;;  %1352 = vpow2.f32 %v1178_v60  ;;  %v1180_v6 = vmul.f32 -1.442695, %v752_v1 }
 0x257   : > { %v809_v2 = vadd.f32 1.0, %v1345_v0  ;;  %v1347_v3 = vpop.eup %1346  ;;  %1354 = vpow2.f32 %v1177_v62  ;;  %v716_v8 = vpop.permute.xlu1 %715  ;;  %v1181_v21 = vmul.f32 -1.442695, %v753_v15 }
 0x258   : > { %v812_v7 = vadd.f32 1.0, %v1347_v3  ;;  %v754_v13 = vsub.f32 %v1572_v28, %v716_v8  ;;  %v718_v24 = vpop.permute.xlu0 %717 }
 0x259   : > { %1356 = vrcp.f32 %v809_v2  ;;  %v755_v27 = vsub.f32 %v1578_v32, %v718_v24 }
 0x25a   : > { %v1349_v5 = vpop.eup %1348  ;;  %1358 = vpow2.f32 %v1180_v6  ;;  %v1182_v17 = vmul.f32 -1.442695, %v754_v13 }
 0x25b   : > { %v811_v10 = vadd.f32 1.0, %v1349_v5  ;;  %1360 = vrcp.f32 %v812_v7  ;;  %v720_v20 = vpop.permute.xlu1 %719  ;;  %v1183_v42 = vmul.f32 -1.442695, %v755_v27 }
 0x25c   : > { %1362 = vpow2.f32 %v1179_v9  ;;  %v756_v25 = vsub.f32 %v1580_v33, %v720_v20  ;;  %v722_v39 = vpop.permute.xlu0 %721 }
 0x25d   : > { %1364 = vrcp.f32 %v811_v10  ;;  %v757_v47 = vsub.f32 %v1586_v36, %v722_v39 }
 0x25e   : > { %1366 = vpow2.f32 %v1182_v17  ;;  %v1184_v34 = vmul.f32 -1.442695, %v756_v25 }
 0x25f   : > { %v1351_v12 = vpop.eup %1350  ;;  %v724_v30 = vpop.permute.xlu1 %723 }
 0x260   : > { %963 = vperm.xlu0 %1308, %v1351_v12   ;;  %v1353_v14 = vpop.eup %1352  ;;  %v858_v26 = vsub.f32 1.0, %v1351_v12  ;;  %v758_v44 = vsub.f32 %v1588_v37, %v724_v30  ;;  %v726_v49 = vpop.permute.xlu0 %725  ;;  %v1185_v37 = vmul.f32 -1.442695, %v757_v47 }
 0x261   : > { %v1355_v16 = vpop.eup %1354  ;;  %v814_v19 = vadd.f32 1.0, %v1353_v14  ;;  %v759_v55 = vsub.f32 %v1594_v40, %v726_v49 }
 0x262   : > { %v813_v23 = vadd.f32 1.0, %v1355_v16  ;;  %v1186_v51 = vmul.f32 -1.442695, %v758_v44 }
 0x263   : > { %v1357_v18 = vpop.eup %1356  ;;  %1368 = vrcp.f32 %v814_v19  ;;  %v728_v32 = vpop.permute.xlu1 %727  ;;  %v1187_v60 = vmul.f32 -1.442695, %v759_v55 }
 0x264   : > { %958 = vperm.xlu1 %1309, %v1357_v18   ;;  %v857_v22 = vsub.f32 1.0, %v1357_v18  ;;  %v1359_v28 = vpop.eup %1358  ;;  %1370 = vpow2.f32 %v1181_v21  ;;  %v760_v52 = vsub.f32 %v1596_v41, %v728_v32 }
 0x265   : > { %v1361_v29 = vpop.eup %1360  ;;  %1372 = vrcp.f32 %v813_v23  ;;  %v816_v38 = vadd.f32 1.0, %v1359_v28 }
 0x266   : > { %878 = vperm.xlu0 %1308, %v857_v22   ;;  %v1363_v31 = vpop.eup %1362  ;;  %v860_v33 = vsub.f32 1.0, %v1361_v29  ;;  %1374 = vpow2.f32 %v1184_v34  ;;  %v1188_v58 = vmul.f32 -1.442695, %v760_v52 }
 0x267   : > { %v1365_v35 = vpop.eup %1364  ;;  %v815_v43 = vadd.f32 1.0, %v1363_v31  ;;  %1376 = vrcp.f32 %v816_v38 }
 0x268   : > { %883 = vperm.xlu1 %1309, %v858_v26   ;;  %v859_v45 = vsub.f32 1.0, %v1365_v35  ;;  %v1367_v46 = vpop.eup %1366  ;;  %1378 = vpow2.f32 %v1183_v42  ;;  %v873_v26 = vlaneseq }
 0x269   : > { %1380 = vrcp.f32 %v815_v43  ;;  %v818_v54 = vadd.f32 1.0, %v1367_v46 }
 0x26a   : > { %973 = vperm.xlu0 %1308, %v1361_v29   ;;  %1382 = vpow2.f32 %v1186_v51  ;;  %v1615_v28 = vand.u32 127, %v873_v26 }
 0x26b   : > { %1384 = vrcp.f32 %v818_v54 }
 0x26c   : > { %968 = vperm.xlu1 %1309, %v1365_v35   ;;  %1386 = vpow2.f32 %v1185_v37  ;;  %vm875_vm2 = vcmp.eq.s32.totalorder %v1615_v28, 0 }
 0x26d   : > { %v1369_v48 = vpop.eup %1368 }
 0x26e   : > { %893 = vperm.xlu0 %1308, %v860_v33   ;;  %v1371_v50 = vpop.eup %1370  ;;  %v862_v56 = vsub.f32 1.0, %v1369_v48 }
 0x26f   : > { %v1373_v53 = vpop.eup %1372  ;;  %v817_v57 = vadd.f32 1.0, %v1371_v50 }
 0x270   : > { %888 = vperm.xlu1 %1309, %v859_v45   ;;  %v861_v36 = vsub.f32 1.0, %v1373_v53  ;;  %v1375_v59 = vpop.eup %1374 }
 0x271   : > { %v1377_v61 = vpop.eup %1376  ;;  %1388 = vrcp.f32 %v817_v57  ;;  %v820_v63 = vadd.f32 1.0, %v1375_v59 }
 0x272   : > { %983 = vperm.xlu0 %1308, %v1369_v48   ;;  %v1379_v41 = vpop.eup %1378  ;;  %1390 = vpow2.f32 %v1188_v58  ;;  %v864_v40 = vsub.f32 1.0, %v1377_v61 }
 0x273   : > { %v1381_v62 = vpop.eup %1380  ;;  %1392 = vpow2.f32 %v1187_v60  ;;  %v819_v0 = vadd.f32 1.0, %v1379_v41 }
 0x274   : > { %978 = vperm.xlu1 %1309, %v1373_v53   ;;  %v863_v1 = vsub.f32 1.0, %v1381_v62  ;;  %1394 = vrcp.f32 %v820_v63  ;;  %v1383_v2 = vpop.eup %1382 }
 0x275   : > { %v1385_v3 = vpop.eup %1384  ;;  %1396 = vrcp.f32 %v819_v0  ;;  %v822_v6 = vadd.f32 1.0, %v1383_v2 }
 0x276   : > { %903 = vperm.xlu0 %1308, %v862_v56   ;;  %v1387_v4 = vpop.eup %1386  ;;  %v866_v8 = vsub.f32 1.0, %v1385_v3 }
 0x277   : > { %v821_v9 = vadd.f32 1.0, %v1387_v4  ;;  %1398 = vrcp.f32 %v822_v6 }
 0x278   : > { %898 = vperm.xlu1 %1309, %v861_v36  }
 0x279   : > { %1400 = vrcp.f32 %v821_v9 }
 0x27a   : > { %993 = vperm.xlu0 %1308, %v1377_v61  }
 0x27b   : > { %v1389_v5 = vpop.eup %1388 }
 0x27c   : > { %988 = vperm.xlu1 %1309, %v1381_v62   ;;  %v1391_v7 = vpop.eup %1390  ;;  %v865_v11 = vsub.f32 1.0, %v1389_v5 }
 0x27d   : > { %v1393_v10 = vpop.eup %1392  ;;  %v824_v12 = vadd.f32 1.0, %v1391_v7 }
 0x27e   : > { %913 = vperm.xlu0 %1308, %v864_v40   ;;  %v1395_v13 = vpop.eup %1394  ;;  %v823_v14 = vadd.f32 1.0, %v1393_v10 }
 0x27f   : > { %v1397_v15 = vpop.eup %1396  ;;  %1402 = vrcp.f32 %v824_v12  ;;  %v868_v16 = vsub.f32 1.0, %v1395_v13 }
 0x280   : > { %908 = vperm.xlu1 %1309, %v863_v1   ;;  %1404 = vrcp.f32 %v823_v14  ;;  %v867_v17 = vsub.f32 1.0, %v1397_v15 }
 0x281   : > { %v1399_v18 = vpop.eup %1398 }
 0x282   : > { %1003 = vperm.xlu0 %1308, %v1385_v3   ;;  %v870_v20 = vsub.f32 1.0, %v1399_v18 }
 0x283   : > { %v1401_v19 = vpop.eup %1400 }
 0x284   : > { %998 = vperm.xlu1 %1309, %v1389_v5   ;;  %v869_v22 = vsub.f32 1.0, %v1401_v19 }
 0x286   : > { %923 = vperm.xlu0 %1308, %v866_v8  }
 0x288   : > { %918 = vperm.xlu1 %1309, %v865_v11  }
 0x289   : > { %v1403_v21 = vpop.eup %1402 }
 0x28a   : > { %1013 = vperm.xlu0 %1308, %v1395_v13   ;;  %v1405_v23 = vpop.eup %1404  ;;  %v872_v24 = vsub.f32 1.0, %v1403_v21 }
 0x28b   : > { %v871_v25 = vsub.f32 1.0, %v1405_v23 }
 0x28c   : > { %1008 = vperm.xlu1 %1309, %v1397_v15  }
 0x28e   : > { %933 = vperm.xlu0 %1308, %v868_v16  }
 0x290   : > { %928 = vperm.xlu1 %1309, %v867_v17  }
 0x292   : > { %1023 = vperm.xlu0 %1308, %v1399_v18  }
 0x294   : > { %1018 = vperm.xlu1 %1309, %v1401_v19  }
 0x296   : > { %943 = vperm.xlu0 %1308, %v870_v20  }
 0x298   : > { %938 = vperm.xlu1 %1309, %v869_v22  }
 0x29a   : > { %953 = vperm.xlu0 %1308, %v872_v24  }
 0x29c   : > { %948 = vperm.xlu1 %1309, %v871_v25  }
 0x29e   : > { %1033 = vperm.xlu0 %1308, %v1403_v21  }
 0x2a0   : > { %1028 = vperm.xlu1 %1309, %v1405_v23  }
 0x2df   : > { %v964_v27 = vpop.permute.xlu0 %963 }
 0x2e3   : > { %v959_v29 = vpop.permute.xlu1 %958 }
 0x2e5   : > { %v879_v30 = vpop.permute.xlu0 %878 }
 0x2e6   : > { %v1036_v31 = vsel %vm875_vm2, %v879_v30, %v959_v29 }
 0x2e7   : > { %1053 = vst.msk [vmem:[%s1623_s17] sm:$0xff] %vm1052_vm3, %v1036_v31  ;;  %v884_v34 = vpop.permute.xlu1 %883 }
 0x2e8   : > { %v1037_v35 = vsel %vm875_vm2, %v884_v34, %v964_v27 }
 0x2e9   : > { %1054 = vst.msk [vmem:[%s1623_s17 + $0x8] sm:$0xff] %vm1052_vm3, %v1037_v35  ;;  %v974_v38 = vpop.permute.xlu0 %973 }
 0x2eb   : > { %v969_v39 = vpop.permute.xlu1 %968 }
 0x2ed   : > { %v894_v42 = vpop.permute.xlu0 %893 }
 0x2ee   : > { %v1039_v33 = vsel %vm875_vm2, %v894_v42, %v974_v38 }
 0x2ef   : > { %1056 = vst.msk [vmem:[%s1623_s17 + $0x18] sm:$0xff] %vm1052_vm3, %v1039_v33  ;;  %v889_v43 = vpop.permute.xlu1 %888 }
 0x2f0   : > { %v1038_v44 = vsel %vm875_vm2, %v889_v43, %v969_v39 }
 0x2f1   : > { %1055 = vst.msk [vmem:[%s1623_s17 + $0x10] sm:$0xff] %vm1052_vm3, %v1038_v44  ;;  %v984_v45 = vpop.permute.xlu0 %983 }
 0x2f3   : > { %v979_v32 = vpop.permute.xlu1 %978 }
 0x2f5   : > { %v904_v46 = vpop.permute.xlu0 %903 }
 0x2f6   : > { %v1041_v47 = vsel %vm875_vm2, %v904_v46, %v984_v45 }
 0x2f7   : > { %1058 = vst.msk [vmem:[%s1623_s17 + $0x28] sm:$0xff] %vm1052_vm3, %v1041_v47  ;;  %v899_v48 = vpop.permute.xlu1 %898 }
 0x2f8   : > { %v1040_v49 = vsel %vm875_vm2, %v899_v48, %v979_v32 }
 0x2f9   : > { %1057 = vst.msk [vmem:[%s1623_s17 + $0x20] sm:$0xff] %vm1052_vm3, %v1040_v49  ;;  %v994_v50 = vpop.permute.xlu0 %993 }
 0x2fb   : > { %v989_v51 = vpop.permute.xlu1 %988 }
 0x2fd   : > { %v914_v52 = vpop.permute.xlu0 %913 }
 0x2fe   : > { %v1043_v53 = vsel %vm875_vm2, %v914_v52, %v994_v50 }
 0x2ff   : > { %1060 = vst.msk [vmem:[%s1623_s17 + $0x38] sm:$0xff] %vm1052_vm3, %v1043_v53  ;;  %v909_v54 = vpop.permute.xlu1 %908 }
 0x300   : > { %v1042_v37 = vsel %vm875_vm2, %v909_v54, %v989_v51 }
 0x301   : > { %1059 = vst.msk [vmem:[%s1623_s17 + $0x30] sm:$0xff] %vm1052_vm3, %v1042_v37  ;;  %v1004_v55 = vpop.permute.xlu0 %1003 }
 0x303   : > { %v999_v56 = vpop.permute.xlu1 %998 }
 0x305   : > { %v924_v57 = vpop.permute.xlu0 %923 }
 0x306   : > { %v1045_v58 = vsel %vm875_vm2, %v924_v57, %v1004_v55 }
 0x307   : > { %1062 = vst.msk [vmem:[%s1623_s17 + $0x48] sm:$0xff] %vm1052_vm3, %v1045_v58  ;;  %v919_v36 = vpop.permute.xlu1 %918 }
 0x308   : > { %v1044_v59 = vsel %vm875_vm2, %v919_v36, %v999_v56 }
 0x309   : > { %1061 = vst.msk [vmem:[%s1623_s17 + $0x40] sm:$0xff] %vm1052_vm3, %v1044_v59  ;;  %v1014_v60 = vpop.permute.xlu0 %1013 }
 0x30b   : > { %v1009_v61 = vpop.permute.xlu1 %1008 }
 0x30d   : > { %v934_v41 = vpop.permute.xlu0 %933 }
 0x30e   : > { %v1047_v62 = vsel %vm875_vm2, %v934_v41, %v1014_v60 }
 0x30f   : > { %1064 = vst.msk [vmem:[%s1623_s17 + $0x58] sm:$0xff] %vm1052_vm3, %v1047_v62  ;;  %v929_v63 = vpop.permute.xlu1 %928 }
 0x310   : > { %v1046_v40 = vsel %vm875_vm2, %v929_v63, %v1009_v61 }
 0x311   : > { %1063 = vst.msk [vmem:[%s1623_s17 + $0x50] sm:$0xff] %vm1052_vm3, %v1046_v40  ;;  %v1024_v0 = vpop.permute.xlu0 %1023 }
 0x313   : > { %v1019_v1 = vpop.permute.xlu1 %1018 }
 0x315   : > { %v944_v2 = vpop.permute.xlu0 %943 }
 0x316   : > { %v1049_v3 = vsel %vm875_vm2, %v944_v2, %v1024_v0 }
 0x317   : > { %1066 = vst.msk [vmem:[%s1623_s17 + $0x68] sm:$0xff] %vm1052_vm3, %v1049_v3  ;;  %v939_v4 = vpop.permute.xlu1 %938 }
 0x318   : > { %v1048_v5 = vsel %vm875_vm2, %v939_v4, %v1019_v1 }
 0x319   : > { %1065 = vst.msk [vmem:[%s1623_s17 + $0x60] sm:$0xff] %vm1052_vm3, %v1048_v5  ;;  %v954_v6 = vpop.permute.xlu0 %953 }
 0x31b   : > { %v949_v7 = vpop.permute.xlu1 %948 }
 0x31d   : > { %v1034_v8 = vpop.permute.xlu0 %1033 }
 0x31e   : > { %v1051_v9 = vsel %vm875_vm2, %v954_v6, %v1034_v8 }
 0x31f   : > { %1068 = vst.msk [vmem:[%s1623_s17 + $0x78] sm:$0xff] %vm1052_vm3, %v1051_v9  ;;  %v1029_v10 = vpop.permute.xlu1 %1028 }
 0x320   : > { %v1050_v11 = vsel %vm875_vm2, %v949_v7, %v1029_v10 }
 0x321   : > { %1067 = vst.msk [vmem:[%s1623_s17 + $0x70] sm:$0xff] %vm1052_vm3, %v1050_v11 }
 0x322 PF: > { %s15_s18 = sadd.s32 1, %s1412_s18  }
 0x323   : > { %p12_p4 = scmp.ge.s32.totalorder %s15_s18, 4  }
 0x325   :  { %14 = sbr.rel (!%p12_p4) target bundleno = 1 (0x1), region = 70 }

</bundles_post_ra>
